<compile_context>
chip_gen: v6e
topology: v6e:2x2x1
jax: 0.10.0
libtpu: 0.0.40
codegen_flags: <defaults>
</compile_context>

<pallas_src>
import jax
import jax.numpy as jnp
import numpy as np
from jax.experimental import pallas as pl
from jax.experimental.pallas import tpu as pltpu

# ---- model sizes (small, consistent with the forward pass) ----
B = 2        # batch (clouds)
N = 64       # points per cloud
BN = B * N   # 128 flattened point rows (exact sublane multiple)
C1 = 16      # encoder conv1 channels
C2 = 32      # encoder conv2 channels
L = 32       # latent dim (bottleneck)
H = 32       # decoder hidden dim
OUT = N * 3  # 192 (lane-dense output width)
LANES = 128  # lane-dense intermediate width

# ---- packed weight-slab layout (row offsets 8-aligned, columns lane-dense) ----
W1_OFF = 0      # rows [0, 4)     : [w1 (3,C1) ; b1 (1,C1)]  (bias folded via ones col)
W2_OFF = 8      # rows [8, 24)    : w2 (C1, C2) padded to 128 cols
W3_OFF = 24     # rows [24, 56)   : w3 (C2, L)  padded to 128 cols
W4_OFF = 56     # rows [56, 88)   : w4 (L,  H)  padded to 128 cols
W5_OFF = 88     # rows [88, 120)  : w5 (H,  H)  padded to 128 cols
W6_OFF = 120    # rows [120, 152) : w6 (H,  OUT)
W_ROWS = 152
W_COLS = OUT    # 192

# ---- bias slab: each bias pre-replicated to an 8-row tile (no sublane broadcasts) ----
B2_OFF, B3_OFF, B4_OFF, B5_OFF, B6_OFF = 0, 8, 16, 24, 32
BIAS_ROWS = 40


def ae_kernel(x_ref, w_ref, b_ref, out_ref):
    # x_ref: (BN, 4) = [x, y, z, 1]   w_ref: (152, 192)   b_ref: (40, 192)   out_ref: (8, 192)

    # ---- encoder layer 1 on the MXU: bias folded through the ones input column ----
    w1 = w_ref[W1_OFF:W1_OFF + 4, 0:LANES]                         # (4, 128)
    h = jnp.maximum(
        jnp.dot(x_ref[...], w1, preferred_element_type=jnp.float32), 0.0)   # (BN, 128)

    # ---- encoder layer 2: true-K slice, 128-lane-dense output, tile-aligned bias add ----
    w2 = w_ref[W2_OFF:W2_OFF + C1, 0:LANES]                        # (C1, 128)
    b2 = b_ref[B2_OFF:B2_OFF + 8, 0:LANES]                         # (8, 128) replicated tile
    h = jnp.dot(h[:, :C1], w2, preferred_element_type=jnp.float32)
    h = jnp.maximum((h.reshape(BN // 8, 8, LANES) + b2).reshape(BN, LANES), 0.0)

    # ---- encoder layer 3 (no ReLU before the symmetric pool) ----
    w3 = w_ref[W3_OFF:W3_OFF + C2, 0:LANES]                        # (C2, 128)
    b3 = b_ref[B3_OFF:B3_OFF + 8, 0:LANES]
    h = jnp.dot(h[:, :C2], w3, preferred_element_type=jnp.float32)
    h = (h.reshape(BN // 8, 8, LANES) + b3).reshape(BN, LANES)     # cols L:128 are exactly 0

    # ---- symmetric max-pool over points, per cloud ----
    # TODO(synk): at real point counts convert this into a running VMEM accumulator
    # across point tiles (pl.when init/finalize, reduction axis "arbitrary").
    z = jnp.max(h.reshape(B, N, LANES), axis=1)                    # (B, 128)
    z = jnp.concatenate(
        [z, jnp.zeros((8 - B, LANES), jnp.float32)], axis=0)       # (8, 128): M >= 8

    # ---- decoder MLP L -> H -> H -> N*3 on 8 sublane rows (rows B:8 discarded) ----
    w4 = w_ref[W4_OFF:W4_OFF + L, 0:LANES]
    b4 = b_ref[B4_OFF:B4_OFF + 8, 0:LANES]
    d = jnp.maximum(
        jnp.dot(z[:, :L], w4, preferred_element_type=jnp.float32) + b4, 0.0)   # (8, 128)

    w5 = w_ref[W5_OFF:W5_OFF + H, 0:LANES]
    b5 = b_ref[B5_OFF:B5_OFF + 8, 0:LANES]
    d = jnp.maximum(
        jnp.dot(d[:, :H], w5, preferred_element_type=jnp.float32) + b5, 0.0)   # (8, 128)

    w6 = w_ref[W6_OFF:W6_OFF + H, 0:OUT]
    b6 = b_ref[B6_OFF:B6_OFF + 8, 0:OUT]
    out_ref[...] = jnp.dot(d[:, :H], w6, preferred_element_type=jnp.float32) + b6  # (8, 192)


def pack_params(params):
    """Pack weights/biases into two lane-dense slabs. Run ONCE at parameter-load
    time (host side) - this is deliberately outside the per-call jit path."""
    (w1, b1, w2, b2, w3, b3, w4, b4, w5, b5, w6, b6) = [
        np.asarray(p, np.float32) for p in params]

    wslab = np.zeros((W_ROWS, W_COLS), np.float32)
    wslab[W1_OFF:W1_OFF + 3, :C1] = w1
    wslab[W1_OFF + 3, :C1] = b1[0]          # layer-1 bias folded as extra K row
    wslab[W2_OFF:W2_OFF + C1, :C2] = w2
    wslab[W3_OFF:W3_OFF + C2, :L] = w3
    wslab[W4_OFF:W4_OFF + L, :H] = w4
    wslab[W5_OFF:W5_OFF + H, :H] = w5
    wslab[W6_OFF:W6_OFF + H, :OUT] = w6

    bslab = np.zeros((BIAS_ROWS, W_COLS), np.float32)
    bslab[B2_OFF:B2_OFF + 8, :C2] = b2[0]   # replicated 8-row tiles
    bslab[B3_OFF:B3_OFF + 8, :L] = b3[0]
    bslab[B4_OFF:B4_OFF + 8, :H] = b4[0]
    bslab[B5_OFF:B5_OFF + 8, :H] = b5[0]
    bslab[B6_OFF:B6_OFF + 8, :OUT] = b6[0]

    return jnp.asarray(wslab), jnp.asarray(bslab)


@jax.jit
def pointcloud_autoencoder(pointclouds, wslab, bslab):
    """pointclouds: (B, N, 3) float32  ->  reconstruction (B, N, 3) float32."""
    assert pointclouds.shape == (B, N, 3), "shape change requires re-deriving the kernel"

    pts = pointclouds.reshape(BN, 3)                                 # free XLA reshape
    x4 = jnp.concatenate([pts, jnp.ones((BN, 1), jnp.float32)], axis=1)   # ones col folds b1

    vmem = pl.BlockSpec(memory_space=pltpu.MemorySpace.VMEM)
    out = pl.pallas_call(
        ae_kernel,
        out_shape=jax.ShapeDtypeStruct((8, OUT), jnp.float32),      # sublane/lane-dense block
        in_specs=[vmem, vmem, vmem],
        out_specs=vmem,
    )(x4, wslab, bslab)

    return out[:B].reshape(B, N, 3)                                  # free slice + reshape


def _reference(pointclouds, params):
    """Pure-JAX reference mirroring the torch module's forward."""
    (w1, b1, w2, b2, w3, b3, w4, b4, w5, b5, w6, b6) = params
    h = jax.nn.relu(pointclouds @ w1 + b1)
    h = jax.nn.relu(h @ w2 + b2)
    h = h @ w3 + b3
    z = jnp.max(h, axis=1)                                           # (B, L)
    d = jax.nn.relu(z @ w4 + b4[0])
    d = jax.nn.relu(d @ w5 + b5[0])
    d = d @ w6 + b6[0]
    return d.reshape(B, N, 3)


def _init_params(key):
    ks = jax.random.split(key, 12)
    def w(k, shape):
        return (0.1 * jax.random.normal(k, shape)).astype(jnp.float32)
    w1 = w(ks[0], (3, C1));   b1 = w(ks[1], (1, C1))
    w2 = w(ks[2], (C1, C2));  b2 = w(ks[3], (1, C2))
    w3 = w(ks[4], (C2, L));   b3 = w(ks[5], (1, L))
    w4 = w(ks[6], (L, H));    b4 = w(ks[7], (1, H))
    w5 = w(ks[8], (H, H));    b5 = w(ks[9], (1, H))
    w6 = w(ks[10], (H, OUT)); b6 = w(ks[11], (1, OUT))
    return (w1, b1, w2, b2, w3, b3, w4, b4, w5, b5, w6, b6)


if __name__ == "__main__":
    key = jax.random.PRNGKey(0)
    k_pts, k_par = jax.random.split(key)
    pointclouds = jax.random.normal(k_pts, (B, N, 3), dtype=jnp.float32)
    params = _init_params(k_par)

    # one-time parameter packing (outside the per-forward jit path)
    wslab, bslab = pack_params(params)
    wslab, bslab = jax.block_until_ready((wslab, bslab))

    out = pointcloud_autoencoder(pointclouds, wslab, bslab)
    out = jax.block_until_ready(out)

    ref = _reference(pointclouds, params)
    assert out.shape == (B, N, 3)
    np.testing.assert_allclose(np.asarray(out), np.asarray(ref), rtol=1e-4, atol=1e-4)

    print("KERNEL_OK")
</pallas_src>

<mosaic_0001>
module attributes {stable_mosaic.version = 11 : i64} {
  func.func @ae_kernel(%arg0: memref<128x4xf32, #tpu.memory_space<vmem>>, %arg1: memref<152x192xf32, #tpu.memory_space<vmem>>, %arg2: memref<40x192xf32, #tpu.memory_space<vmem>>, %arg3: memref<8x192xf32, #tpu.memory_space<vmem>>) attributes {dimension_semantics = [], scalar_prefetch = 0 : i64, scratch_operands = 0 : i64, tpu.core_type = #tpu.core_type<tc>} {
    %c0 = arith.constant 0 : index
    %c0_0 = arith.constant 0 : index
    %0 = vector.load %arg1[%c0, %c0_0] : memref<152x192xf32, #tpu.memory_space<vmem>>, vector<4x128xf32>
    %c0_1 = arith.constant 0 : index
    %c0_2 = arith.constant 0 : index
    %1 = vector.load %arg0[%c0_1, %c0_2] : memref<128x4xf32, #tpu.memory_space<vmem>>, vector<128x4xf32>
    %cst = arith.constant dense<0.000000e+00> : vector<128x128xf32>
    %2 = tpu.matmul %1, %0, %cst {dimension_numbers = #tpu.dot_dimension_numbers<[1], [0], [0], [1], [0, 0, 1, 1], [], []>} : vector<128x4xf32>, vector<4x128xf32>, vector<128x128xf32> -> vector<128x128xf32>
    %cst_3 = arith.constant 0.000000e+00 : f32
    %3 = vector.broadcast %cst_3 : f32 to vector<128x128xf32>
    %4 = arith.maximumf %2, %3 : vector<128x128xf32>
    %c8 = arith.constant 8 : index
    %c0_4 = arith.constant 0 : index
    %5 = vector.load %arg1[%c8, %c0_4] : memref<152x192xf32, #tpu.memory_space<vmem>>, vector<16x128xf32>
    %c0_5 = arith.constant 0 : index
    %c0_6 = arith.constant 0 : index
    %6 = vector.load %arg2[%c0_5, %c0_6] : memref<40x192xf32, #tpu.memory_space<vmem>>, vector<8x128xf32>
    %7 = vector.extract_strided_slice %4 {offsets = [0, 0], sizes = [128, 16], strides = [1, 1]} : vector<128x128xf32> to vector<128x16xf32>
    %cst_7 = arith.constant dense<0.000000e+00> : vector<128x128xf32>
    %8 = tpu.matmul %7, %5, %cst_7 {dimension_numbers = #tpu.dot_dimension_numbers<[1], [0], [0], [1], [0, 0, 1, 1], [], []>} : vector<128x16xf32>, vector<16x128xf32>, vector<128x128xf32> -> vector<128x128xf32>
    %9 = vector.shape_cast %8 : vector<128x128xf32> to vector<16x8x128xf32>
    %10 = vector.shape_cast %6 : vector<8x128xf32> to vector<1x8x128xf32>
    %11 = vector.broadcast %10 : vector<1x8x128xf32> to vector<16x8x128xf32>
    %12 = arith.addf %9, %11 : vector<16x8x128xf32>
    %13 = vector.shape_cast %12 : vector<16x8x128xf32> to vector<128x128xf32>
    %cst_8 = arith.constant 0.000000e+00 : f32
    %14 = vector.broadcast %cst_8 : f32 to vector<128x128xf32>
    %15 = arith.maximumf %13, %14 : vector<128x128xf32>
    %c24 = arith.constant 24 : index
    %c0_9 = arith.constant 0 : index
    %16 = vector.load %arg1[%c24, %c0_9] : memref<152x192xf32, #tpu.memory_space<vmem>>, vector<32x128xf32>
    %c8_10 = arith.constant 8 : index
    %c0_11 = arith.constant 0 : index
    %17 = vector.load %arg2[%c8_10, %c0_11] : memref<40x192xf32, #tpu.memory_space<vmem>>, vector<8x128xf32>
    %18 = vector.extract_strided_slice %15 {offsets = [0, 0], sizes = [128, 32], strides = [1, 1]} : vector<128x128xf32> to vector<128x32xf32>
    %cst_12 = arith.constant dense<0.000000e+00> : vector<128x128xf32>
    %19 = tpu.matmul %18, %16, %cst_12 {dimension_numbers = #tpu.dot_dimension_numbers<[1], [0], [0], [1], [0, 0, 1, 1], [], []>} : vector<128x32xf32>, vector<32x128xf32>, vector<128x128xf32> -> vector<128x128xf32>
    %20 = vector.shape_cast %19 : vector<128x128xf32> to vector<16x8x128xf32>
    %21 = vector.shape_cast %17 : vector<8x128xf32> to vector<1x8x128xf32>
    %22 = vector.broadcast %21 : vector<1x8x128xf32> to vector<16x8x128xf32>
    %23 = arith.addf %20, %22 : vector<16x8x128xf32>
    %24 = vector.shape_cast %23 : vector<16x8x128xf32> to vector<128x128xf32>
    %25 = vector.shape_cast %24 : vector<128x128xf32> to vector<2x64x128xf32>
    %cst_13 = arith.constant dense<0xFF800000> : vector<2x128xf32>
    %26 = vector.multi_reduction <maximumf>, %25, %cst_13 [1] : vector<2x64x128xf32> to vector<2x128xf32>
    %cst_14 = arith.constant 0.000000e+00 : f32
    %27 = vector.broadcast %cst_14 : f32 to vector<6x128xf32>
    %28 = tpu.concatenate %26, %27 in 0 : vector<2x128xf32>, vector<6x128xf32> -> vector<8x128xf32>
    %c56 = arith.constant 56 : index
    %c0_15 = arith.constant 0 : index
    %29 = vector.load %arg1[%c56, %c0_15] : memref<152x192xf32, #tpu.memory_space<vmem>>, vector<32x128xf32>
    %c16 = arith.constant 16 : index
    %c0_16 = arith.constant 0 : index
    %30 = vector.load %arg2[%c16, %c0_16] : memref<40x192xf32, #tpu.memory_space<vmem>>, vector<8x128xf32>
    %31 = vector.extract_strided_slice %28 {offsets = [0, 0], sizes = [8, 32], strides = [1, 1]} : vector<8x128xf32> to vector<8x32xf32>
    %cst_17 = arith.constant dense<0.000000e+00> : vector<8x128xf32>
    %32 = tpu.matmul %31, %29, %cst_17 {dimension_numbers = #tpu.dot_dimension_numbers<[1], [0], [0], [1], [0, 0, 1, 1], [], []>} : vector<8x32xf32>, vector<32x128xf32>, vector<8x128xf32> -> vector<8x128xf32>
    %33 = arith.addf %32, %30 : vector<8x128xf32>
    %cst_18 = arith.constant 0.000000e+00 : f32
    %34 = vector.broadcast %cst_18 : f32 to vector<8x128xf32>
    %35 = arith.maximumf %33, %34 : vector<8x128xf32>
    %c88 = arith.constant 88 : index
    %c0_19 = arith.constant 0 : index
    %36 = vector.load %arg1[%c88, %c0_19] : memref<152x192xf32, #tpu.memory_space<vmem>>, vector<32x128xf32>
    %c24_20 = arith.constant 24 : index
    %c0_21 = arith.constant 0 : index
    %37 = vector.load %arg2[%c24_20, %c0_21] : memref<40x192xf32, #tpu.memory_space<vmem>>, vector<8x128xf32>
    %38 = vector.extract_strided_slice %35 {offsets = [0, 0], sizes = [8, 32], strides = [1, 1]} : vector<8x128xf32> to vector<8x32xf32>
    %cst_22 = arith.constant dense<0.000000e+00> : vector<8x128xf32>
    %39 = tpu.matmul %38, %36, %cst_22 {dimension_numbers = #tpu.dot_dimension_numbers<[1], [0], [0], [1], [0, 0, 1, 1], [], []>} : vector<8x32xf32>, vector<32x128xf32>, vector<8x128xf32> -> vector<8x128xf32>
    %40 = arith.addf %39, %37 : vector<8x128xf32>
    %cst_23 = arith.constant 0.000000e+00 : f32
    %41 = vector.broadcast %cst_23 : f32 to vector<8x128xf32>
    %42 = arith.maximumf %40, %41 : vector<8x128xf32>
    %c120 = arith.constant 120 : index
    %c0_24 = arith.constant 0 : index
    %43 = vector.load %arg1[%c120, %c0_24] : memref<152x192xf32, #tpu.memory_space<vmem>>, vector<32x192xf32>
    %c32 = arith.constant 32 : index
    %c0_25 = arith.constant 0 : index
    %44 = vector.load %arg2[%c32, %c0_25] : memref<40x192xf32, #tpu.memory_space<vmem>>, vector<8x192xf32>
    %45 = vector.extract_strided_slice %42 {offsets = [0, 0], sizes = [8, 32], strides = [1, 1]} : vector<8x128xf32> to vector<8x32xf32>
    %cst_26 = arith.constant dense<0.000000e+00> : vector<8x192xf32>
    %46 = tpu.matmul %45, %43, %cst_26 {dimension_numbers = #tpu.dot_dimension_numbers<[1], [0], [0], [1], [0, 0, 1, 1], [], []>} : vector<8x32xf32>, vector<32x192xf32>, vector<8x192xf32> -> vector<8x192xf32>
    %47 = arith.addf %46, %44 : vector<8x192xf32>
    %c0_27 = arith.constant 0 : index
    %c0_28 = arith.constant 0 : index
    %48 = vector.load %arg3[%c0_27, %c0_28] : memref<8x192xf32, #tpu.memory_space<vmem>>, vector<8x192xf32>
    tpu.vector_store %arg3[%c0_27, %c0_28], %47 {strides = array<i32>} : memref<8x192xf32, #tpu.memory_space<vmem>>, vector<8x192xf32>,
    return
  }
}

</mosaic_0001>

<bundles_post_ra>
// kernel: pointcloud_autoencoder.1
= control target key start
LH: loop header
LB: loop body
LE: loop exit
PB: predicated region body
PF: predicated region fallthrough
CT: control target
= control target key end

     0   :  { %vm80_vm0 = vcmask 1043456   ;;  %vm31_vm1 = vcmask 31744   ;;  %vm248_vm2 = vcmask 130048   ;;  %vm479_vm3 = vcmask 261120   ;;  %s1427_s1 = inlined_call_operand.vmem [shape: f32[152,192], index: 1, kind: input, shape index: {}]   ;;  %s1428_s0 = inlined_call_operand.vmem [shape: f32[128,4], index: 0, kind: input, shape index: {}]   ;;  %s1429_s2 = inlined_call_operand.vmem [shape: f32[40,192], index: 2, kind: input, shape index: {}]   ;;  %s1430_s3 = inlined_call_operand.vmem [shape: f32[8,192], index: 3, kind: output, shape index: {}]  }
   0x1   :  { %v14_v0 = vld [vmem:[%s1427_s1] sm:$0xf]  ;;  %v16_v2 = vld [vmem:[%s1428_s0 + $0x8] sm:$0xff]  ;;  %v17_v3 = vld [vmem:[%s1428_s0 + $0x10] sm:$0xff]  ;;  %vm1201_vm4 = vmmov 0   ;;  %vm717_vm5 = vcmask 1041409  }
   0x2   :  { %v15_v1 = vld [vmem:[%s1428_s0] sm:$0xff]  ;;  %1088 = vmatprep.subr.msk.mxu0 %vm80_vm0, %v14_v0  ;;  %1196 = vmatprep.subr.msk.mxu1 %vm80_vm0, %v14_v0  ;;  %v18_v4 = vld [vmem:[%s1428_s0 + $0x18] sm:$0xff]  ;;  %v29_v6 = vld [vmem:[%s1428_s0 + $0x70] sm:$0xff]  ;;  %vm720_vm6 = vcmask 1041408   ;;  %vm965_vm7 = vcmask 523264  }
   0x3   :  { %1090 = vmatprep.mubr.msk.f32.mxu0 %vm31_vm1, %v15_v1  ;;  %1089 = vmatpush3.msk.msra.mxu0 %vm80_vm0, %v14_v0  ;;  %v19_v5 = vld [vmem:[%s1428_s0 + $0x20] sm:$0xff]  ;;  %v30_v7 = vld [vmem:[%s1428_s0 + $0x78] sm:$0xff]  ;;  %v20_v8 = vld [vmem:[%s1428_s0 + $0x28] sm:$0xff] }
   0x4   :  { %1091 = vmatmul.mubr.msk.f32.vlgmr.msra.gmra.mxu0 %vm31_vm1, %v16_v2  ;;  %1197 = vmatpush3.msk.msra.mxu1 %vm80_vm0, %v14_v0  ;;  %v21_v9 = vld [vmem:[%s1428_s0 + $0x30] sm:$0xff]  ;;  %v22_v10 = vld [vmem:[%s1428_s0 + $0x38] sm:$0xff]  ;;  %v23_v11 = vld [vmem:[%s1428_s0 + $0x40] sm:$0xff] }
   0x5   :  { %1093 = vmatprep.mubr.msk.f32.mxu0 %vm31_vm1, %v17_v3  ;;  %1111 = vmatprep.mubr.msk.f32.mxu1 %vm31_vm1, %v29_v6  ;;  %v24_v12 = vld [vmem:[%s1428_s0 + $0x48] sm:$0xff]  ;;  %v25_v13 = vld [vmem:[%s1428_s0 + $0x50] sm:$0xff]  ;;  %v26_v14 = vld [vmem:[%s1428_s0 + $0x58] sm:$0xff] }
   0x6   :  { %1112 = vmatmul.mubr.msk.f32.vlgmr.msra.gmra.mxu1 %vm31_vm1, %v30_v7  ;;  %v27_v15 = vld [vmem:[%s1428_s0 + $0x60] sm:$0xff]  ;;  %v28_v16 = vld [vmem:[%s1428_s0 + $0x68] sm:$0xff]  ;;  %v245_v18 = vld [vmem:[%s1427_s1 + $0x10] sm:$0xff] }
   0x7   :  { %v246_v17 = vld [vmem:[%s1427_s1 + $0x20] sm:$0xff]  ;;  %v476_v20 = vld [vmem:[%s1427_s1 + $0x50] sm:$0xff] }
   0x8   :  { %1094 = vmatmul.mubr.msk.f32.gmra.mxu0 %vm31_vm1, %v18_v4  ;;  %1114 = vmatprep.subr.mxu1 %v246_v17  ;;  %v477_v19 = vld [vmem:[%s1427_s1 + $0x60] sm:$0xff]  ;;  %v474_v54 = vld [vmem:[%s1427_s1 + $0x30] sm:$0xff] }
   0x9   :  { %1096 = vmatprep.mubr.msk.f32.mxu0 %vm31_vm1, %v19_v5  ;;  %1115 = vmatpush3.msra.mxu1 %v246_v17  ;;  %v475_v21 = vld [vmem:[%s1427_s1 + $0x40] sm:$0xff] }
   0xa   :  { %1116 = vmatprep.subr.mxu1 %v245_v18  ;;  %1142 = vmatprep.subr.mxu0 %v477_v19  ;;  %v247_v55 = vld [vmem:[%s1429_s2] sm:$0xff] }
   0xb   :  { %1117 = vmatpush3.msra.mxu1 %v245_v18  ;;  %1143 = vmatpush3.msra.mxu0 %v477_v19 }
   0xc   :  { %1097 = vmatmul.mubr.msk.f32.gmra.mxu0 %vm31_vm1, %v20_v8  ;;  %1144 = vmatprep.subr.mxu0 %v476_v20 }
   0xd   :  { %1099 = vmatprep.mubr.msk.f32.mxu0 %vm31_vm1, %v21_v9  ;;  %1145 = vmatpush3.msra.mxu0 %v476_v20 }
   0xe   :  { %1146 = vmatprep.subr.mxu0 %v475_v21 }
   0xf   :  { %1147 = vmatpush3.msra.mxu0 %v475_v21 }
  0x10   :  { %1100 = vmatmul.mubr.msk.f32.gmra.mxu0 %vm31_vm1, %v22_v10  ;;  %1148 = vmatprep.subr.mxu0 %v474_v54 }
  0x11   :  { %1102 = vmatprep.mubr.msk.f32.mxu0 %vm31_vm1, %v23_v11  ;;  %1149 = vmatpush3.msra.mxu0 %v474_v54 }
  0x14   :  { %1103 = vmatmul.mubr.msk.f32.gmra.mxu0 %vm31_vm1, %v24_v12 }
  0x15   :  { %1105 = vmatprep.mubr.msk.f32.mxu0 %vm31_vm1, %v25_v13 }
  0x18   :  { %1106 = vmatmul.mubr.msk.f32.gmra.mxu0 %vm31_vm1, %v26_v14 }
  0x19   :  { %1108 = vmatprep.mubr.msk.f32.mxu0 %vm31_vm1, %v27_v15 }
  0x1c   :  { %1109 = vmatmul.mubr.msk.f32.gmra.mxu0 %vm31_vm1, %v28_v16 }
  0xc4   :  { %v1092_v22 = vpop.f32.mrf.mxu0 }
  0xc5   :  { %v230_v25 = vmax.f32 %v1092_v22, 0.0 }
  0xc6   :  { %v150_v23 = vpop.f32.mrf.mxu0  ;;  %v1113_v43 = vpop.f32.mrf.mxu1 }
  0xc7   :  { %v229_v24 = vmax.f32 %v150_v23, 0.0  ;;  %v244_v53 = vmax.f32 %v1113_v43, 0.0  ;;  %v723_v43 = vld [vmem:[%s1427_s1 + $0x80] sm:$0xff] }
  0xc8   :  { %v1095_v26 = vpop.f32.mrf.mxu0  ;;  %v220_v48 = vpop.f32.mrf.mxu1 }
  0xc9   :  { %1118 = vmatprep.mubr.msk.f32.mxu1 %vm248_vm2, %v229_v24  ;;  %v232_v29 = vmax.f32 %v1095_v26, 0.0  ;;  %v243_v51 = vmax.f32 %v220_v48, 0.0 }
  0xca   :  { %v160_v27 = vpop.f32.mrf.mxu0  ;;  %1119 = vmatmul.mubr.msk.f32.vlgmr.msra.gmra.mxu1 %vm248_vm2, %v230_v25 }
  0xcb   :  { %v231_v28 = vmax.f32 %v160_v27, 0.0 }
  0xcc   :  { %v1098_v30 = vpop.f32.mrf.mxu0 }
  0xcd   :  { %1121 = vmatprep.mubr.msk.f32.mxu1 %vm248_vm2, %v231_v28  ;;  %v234_v33 = vmax.f32 %v1098_v30, 0.0 }
  0xce   :  { %v170_v31 = vpop.f32.mrf.mxu0  ;;  %1122 = vmatmul.mubr.msk.f32.gmra.mxu1 %vm248_vm2, %v232_v29 }
  0xcf   :  { %v233_v32 = vmax.f32 %v170_v31, 0.0 }
  0xd0   :  { %v1101_v34 = vpop.f32.mrf.mxu0 }
  0xd1   :  { %1124 = vmatprep.mubr.msk.f32.mxu1 %vm248_vm2, %v233_v32  ;;  %v236_v37 = vmax.f32 %v1101_v34, 0.0 }
  0xd2   :  { %v180_v35 = vpop.f32.mrf.mxu0  ;;  %1125 = vmatmul.mubr.msk.f32.gmra.mxu1 %vm248_vm2, %v234_v33 }
  0xd3   :  { %v235_v36 = vmax.f32 %v180_v35, 0.0 }
  0xd4   :  { %v1104_v38 = vpop.f32.mrf.mxu0 }
  0xd5   :  { %1127 = vmatprep.mubr.msk.f32.mxu1 %vm248_vm2, %v235_v36  ;;  %v238_v41 = vmax.f32 %v1104_v38, 0.0 }
  0xd6   :  { %v190_v39 = vpop.f32.mrf.mxu0  ;;  %1128 = vmatmul.mubr.msk.f32.gmra.mxu1 %vm248_vm2, %v236_v37 }
  0xd7   :  { %v237_v40 = vmax.f32 %v190_v39, 0.0 }
  0xd8   :  { %v1107_v42 = vpop.f32.mrf.mxu0 }
  0xd9   :  { %1130 = vmatprep.mubr.msk.f32.mxu1 %vm248_vm2, %v237_v40  ;;  %v240_v46 = vmax.f32 %v1107_v42, 0.0  ;;  %v725_v40 = vld [vmem:[%s1427_s1 + $0xa0] sm:$0xff]  ;;  %v724_v42 = vld [vmem:[%s1427_s1 + $0x90] sm:$0xff] }
  0xda   :  { %v200_v44 = vpop.f32.mrf.mxu0  ;;  %1131 = vmatmul.mubr.msk.f32.gmra.mxu1 %vm248_vm2, %v238_v41  ;;  %v1200_v41 = vmov 0.0  }
  0xdb   :  { %v239_v45 = vmax.f32 %v200_v44, 0.0  ;;  %1174 = vmatprep.subr.mxu1 %v1200_v41  ;;  %v722_v44 = vld [vmem:[%s1427_s1 + $0x70] sm:$0xff] }
  0xdc   :  { %v1110_v47 = vpop.f32.mrf.mxu0  ;;  %1175 = vmatpush3.msra.mxu1 %v725_v40 }
  0xdd   :  { %1133 = vmatprep.mubr.msk.f32.mxu1 %vm248_vm2, %v239_v45  ;;  %v242_v52 = vmax.f32 %v1110_v47, 0.0  ;;  %1176 = vmatprep.subr.mxu1 %v1200_v41 }
  0xde   :  { %v210_v49 = vpop.f32.mrf.mxu0  ;;  %1134 = vmatmul.mubr.msk.f32.gmra.mxu1 %vm248_vm2, %v240_v46 }
  0xdf   :  { %v241_v50 = vmax.f32 %v210_v49, 0.0  ;;  %1177 = vmatpush3.msra.mxu1 %v724_v42  ;;  %v804_v42 = vld [vmem:[%s1427_s1 + $0xe0] sm:$0xff] }
  0xe0   :  { %1178 = vmatprep.subr.mxu1 %v1200_v41 }
  0xe1   :  { %1136 = vmatprep.mubr.msk.f32.mxu1 %vm248_vm2, %v241_v50  ;;  %1179 = vmatpush3.msra.mxu1 %v723_v43  ;;  %v478_v50 = vld [vmem:[%s1429_s2 + $0x10] sm:$0xff] }
  0xe2   :  { %1137 = vmatmul.mubr.msk.f32.gmra.mxu1 %vm248_vm2, %v242_v52  ;;  %1180 = vmatprep.subr.mxu1 %v1200_v41 }
  0xe3   :  { %1139 = vmatprep.mubr.msk.f32.mxu1 %vm248_vm2, %v243_v51  ;;  %1181 = vmatpush3.msra.mxu1 %v722_v44  ;;  %v803_v44 = vld [vmem:[%s1427_s1 + $0xd0] sm:$0xff] }
  0xe4   :  { %1185 = vmatprep.subr.mxu1 %v1200_v41 }
  0xe6   :  { %1140 = vmatmul.mubr.msk.f32.gmra.mxu1 %vm248_vm2, %v244_v53 }
  0xe7   :  { %1182 = vmatprep.mubr.msk.f32.mxu1 %vm1201_vm4, %v1200_v41 }
 0x18a   :  { %v1120_v56 = vpop.f32.mrf.mxu1 }
 0x18b   :  { %v443_v57 = vadd.f32 %v1120_v56, %v247_v55 }
 0x18c   :  { %v363_v58 = vpop.f32.mrf.mxu1 }
 0x18d   :  { %v442_v59 = vadd.f32 %v363_v58, %v247_v55  ;;  %v459_v62 = vmax.f32 %v443_v57, 0.0 }
 0x18e   :  { %v1123_v60 = vpop.f32.mrf.mxu1 }
 0x18f   :  { %v458_v61 = vmax.f32 %v442_v59, 0.0  ;;  %v445_v63 = vadd.f32 %v1123_v60, %v247_v55 }
 0x190   :  { %v373_v0 = vpop.f32.mrf.mxu1 }
 0x191   :  { %v444_v1 = vadd.f32 %v373_v0, %v247_v55  ;;  %1150 = vmatprep.mubr.msk.f32.mxu0 %vm479_vm3, %v458_v61  ;;  %v461_v4 = vmax.f32 %v445_v63, 0.0 }
 0x192   :  { %v1126_v2 = vpop.f32.mrf.mxu1  ;;  %1151 = vmatmul.mubr.msk.f32.vlgmr.msra.gmra.mxu0 %vm479_vm3, %v459_v62 }
 0x193   :  { %v460_v3 = vmax.f32 %v444_v1, 0.0  ;;  %v447_v5 = vadd.f32 %v1126_v2, %v247_v55 }
 0x194   :  { %v383_v6 = vpop.f32.mrf.mxu1 }
 0x195   :  { %v446_v7 = vadd.f32 %v383_v6, %v247_v55  ;;  %1153 = vmatprep.mubr.msk.f32.mxu0 %vm479_vm3, %v460_v3  ;;  %v463_v10 = vmax.f32 %v447_v5, 0.0 }
 0x196   :  { %v1129_v8 = vpop.f32.mrf.mxu1  ;;  %1154 = vmatmul.mubr.msk.f32.gmra.mxu0 %vm479_vm3, %v461_v4 }
 0x197   :  { %v462_v9 = vmax.f32 %v446_v7, 0.0  ;;  %v449_v11 = vadd.f32 %v1129_v8, %v247_v55 }
 0x198   :  { %v393_v12 = vpop.f32.mrf.mxu1 }
 0x199   :  { %v448_v13 = vadd.f32 %v393_v12, %v247_v55  ;;  %1156 = vmatprep.mubr.msk.f32.mxu0 %vm479_vm3, %v462_v9  ;;  %v465_v16 = vmax.f32 %v449_v11, 0.0 }
 0x19a   :  { %v1132_v14 = vpop.f32.mrf.mxu1  ;;  %1157 = vmatmul.mubr.msk.f32.gmra.mxu0 %vm479_vm3, %v463_v10 }
 0x19b   :  { %v464_v15 = vmax.f32 %v448_v13, 0.0  ;;  %v451_v17 = vadd.f32 %v1132_v14, %v247_v55 }
 0x19c   :  { %v403_v18 = vpop.f32.mrf.mxu1 }
 0x19d   :  { %v450_v19 = vadd.f32 %v403_v18, %v247_v55  ;;  %1159 = vmatprep.mubr.msk.f32.mxu0 %vm479_vm3, %v464_v15  ;;  %v467_v22 = vmax.f32 %v451_v17, 0.0 }
 0x19e   :  { %v1135_v20 = vpop.f32.mrf.mxu1  ;;  %1160 = vmatmul.mubr.msk.f32.gmra.mxu0 %vm479_vm3, %v465_v16 }
 0x19f   :  { %v466_v21 = vmax.f32 %v450_v19, 0.0  ;;  %v453_v23 = vadd.f32 %v1135_v20, %v247_v55 }
 0x1a0   :  { %v413_v24 = vpop.f32.mrf.mxu1 }
 0x1a1   :  { %v452_v25 = vadd.f32 %v413_v24, %v247_v55  ;;  %1162 = vmatprep.mubr.msk.f32.mxu0 %vm479_vm3, %v466_v21  ;;  %v469_v28 = vmax.f32 %v453_v23, 0.0 }
 0x1a2   :  { %v1138_v26 = vpop.f32.mrf.mxu1  ;;  %1163 = vmatmul.mubr.msk.f32.gmra.mxu0 %vm479_vm3, %v467_v22 }
 0x1a3   :  { %v468_v27 = vmax.f32 %v452_v25, 0.0  ;;  %v455_v29 = vadd.f32 %v1138_v26, %v247_v55 }
 0x1a4   :  { %v423_v30 = vpop.f32.mrf.mxu1 }
 0x1a5   :  { %v454_v31 = vadd.f32 %v423_v30, %v247_v55  ;;  %1165 = vmatprep.mubr.msk.f32.mxu0 %vm479_vm3, %v468_v27  ;;  %v471_v34 = vmax.f32 %v455_v29, 0.0 }
 0x1a6   :  { %v1141_v32 = vpop.f32.mrf.mxu1  ;;  %1166 = vmatmul.mubr.msk.f32.gmra.mxu0 %vm479_vm3, %v469_v28 }
 0x1a7   :  { %v470_v33 = vmax.f32 %v454_v31, 0.0  ;;  %v457_v35 = vadd.f32 %v1141_v32, %v247_v55 }
 0x1a8   :  { %v433_v36 = vpop.f32.mrf.mxu1 }
 0x1a9   :  { %v456_v37 = vadd.f32 %v433_v36, %v247_v55  ;;  %1168 = vmatprep.mubr.msk.f32.mxu0 %vm479_vm3, %v470_v33  ;;  %v473_v39 = vmax.f32 %v457_v35, 0.0 }
 0x1aa   :  { %1169 = vmatmul.mubr.msk.f32.gmra.mxu0 %vm479_vm3, %v471_v34 }
 0x1ab   :  { %v472_v38 = vmax.f32 %v456_v37, 0.0 }
 0x1ad   :  { %1171 = vmatprep.mubr.msk.f32.mxu0 %vm479_vm3, %v472_v38 }
 0x1ae   :  { %1172 = vmatmul.mubr.msk.f32.gmra.mxu0 %vm479_vm3, %v473_v39 }
 0x252   :  { %v1152_v45 = vpop.f32.mrf.mxu0 }
 0x253   :  { %v674_v58 = vadd.f32 %v1152_v45, %v478_v50  ;;  %v802_v45 = vld [vmem:[%s1427_s1 + $0xc0] sm:$0xff] }
 0x254   :  { %v594_v46 = vpop.f32.mrf.mxu0 }
 0x255   :  { %v673_v54 = vadd.f32 %v594_v46, %v478_v50  ;;  %v801_v46 = vld [vmem:[%s1427_s1 + $0xb0] sm:$0xff] }
 0x256   :  { %v1155_v47 = vpop.f32.mrf.mxu0 }
 0x257   :  { %v676_v55 = vadd.f32 %v1155_v47, %v478_v50  ;;  %v887_v47 = vld [vmem:[%s1427_s1 + $0x128] sm:$0xff] }
 0x258   :  { %v604_v48 = vpop.f32.mrf.mxu0 }
 0x259   :  { %v675_v52 = vadd.f32 %v604_v48, %v478_v50  ;;  %v690_v63 = vmax.f32 %v674_v58, %v676_v55  ;;  %v726_v48 = vld [vmem:[%s1429_s2 + $0x20] sm:$0xff]  ;;  %v884_v55 = vld [vmem:[%s1427_s1 + $0x110] sm:$0xff] }
 0x25a   :  { %v1158_v49 = vpop.f32.mrf.mxu0  ;;  %v880_v58 = vld [vmem:[%s1427_s1 + $0xf0] sm:$0xff] }
 0x25b   :  { %v689_v59 = vmax.f32 %v673_v54, %v675_v52  ;;  %v678_v60 = vadd.f32 %v1158_v49, %v478_v50  ;;  %v885_v54 = vld [vmem:[%s1427_s1 + $0x118] sm:$0xff] }
 0x25c   :  { %v614_v51 = vpop.f32.mrf.mxu0 }
 0x25d   :  { %v677_v56 = vadd.f32 %v614_v51, %v478_v50  ;;  %v692_v3 = vmax.f32 %v690_v63, %v678_v60 }
 0x25e   :  { %v1161_v53 = vpop.f32.mrf.mxu0 }
 0x25f   :  { %v691_v0 = vmax.f32 %v689_v59, %v677_v56  ;;  %v680_v1 = vadd.f32 %v1161_v53, %v478_v50  ;;  %v886_v53 = vld [vmem:[%s1427_s1 + $0x120] sm:$0xff]  ;;  %v883_v56 = vld [vmem:[%s1427_s1 + $0x108] sm:$0xff]  ;;  %v805_v59 = vld [vmem:[%s1429_s2 + $0x30] sm:$0xff] }
 0x260   :  { %v624_v57 = vpop.f32.mrf.mxu0 }
 0x261   :  { %v679_v61 = vadd.f32 %v624_v57, %v478_v50  ;;  %v694_v6 = vmax.f32 %v692_v3, %v680_v1  ;;  %v882_v57 = vld [vmem:[%s1427_s1 + $0x100] sm:$0xff] }
 0x262   :  { %v1164_v62 = vpop.f32.mrf.mxu0 }
 0x263   :  { %v693_v4 = vmax.f32 %v691_v0, %v679_v61  ;;  %v682_v12 = vadd.f32 %v1164_v62, %v478_v50  ;;  %v888_v0 = vld [vmem:[%s1429_s2 + $0x40] sm:$0xff] }
 0x264   :  { %v634_v2 = vpop.f32.mrf.mxu0 }
 0x265   :  { %v695_v8 = vmax.f32 %v693_v4, %v694_v6  ;;  %v681_v15 = vadd.f32 %v634_v2, %v478_v50  ;;  %v889_v2 = vld [vmem:[%s1429_s2 + $0x48] sm:$0xff] }
 0x266   :  { %v1167_v5 = vpop.f32.mrf.mxu0 }
 0x267   :  { %v684_v10 = vadd.f32 %v1167_v5, %v478_v50  ;;  %v696_v14 = vrot.slane %v695_v8, 4 }
 0x268   :  { %v644_v7 = vpop.f32.mrf.mxu0 }
 0x269   :  { %v683_v11 = vadd.f32 %v644_v7, %v478_v50  ;;  %v703_v19 = vmax.f32 %v682_v12, %v684_v10  ;;  %v697_v23 = vmax.f32 %v695_v8, %v696_v14 }
 0x26a   :  { %v1170_v9 = vpop.f32.mrf.mxu0 }
 0x26b   :  { %v686_v16 = vadd.f32 %v1170_v9, %v478_v50  ;;  %v702_v20 = vmax.f32 %v681_v15, %v683_v11  ;;  %v698_v29 = vrot.slane %v697_v23, 2 }
 0x26c   :  { %v654_v13 = vpop.f32.mrf.mxu0 }
 0x26d   :  { %v685_v17 = vadd.f32 %v654_v13, %v478_v50  ;;  %v705_v24 = vmax.f32 %v703_v19, %v686_v16  ;;  %v699_v32 = vmax.f32 %v697_v23, %v698_v29 }
 0x26e   :  { %v1173_v18 = vpop.f32.mrf.mxu0 }
 0x26f   :  { %v688_v21 = vadd.f32 %v1173_v18, %v478_v50  ;;  %v704_v25 = vmax.f32 %v702_v20, %v685_v17  ;;  %v700_v35 = vrot.slane %v699_v32, 1 }
 0x270   :  { %v664_v22 = vpop.f32.mrf.mxu0 }
 0x271   :  { %v687_v26 = vadd.f32 %v664_v22, %v478_v50  ;;  %v707_v27 = vmax.f32 %v705_v24, %v688_v21  ;;  %v701_v38 = vmax.f32 %v699_v32, %v700_v35 }
 0x273   :  { %v706_v28 = vmax.f32 %v704_v25, %v687_v26 }
 0x275   :  { %v708_v30 = vmax.f32 %v706_v28, %v707_v27 }
 0x277   :  { %v709_v31 = vrot.slane %v708_v30, 4 }
 0x279   :  { %v710_v33 = vmax.f32 %v708_v30, %v709_v31 }
 0x27b   :  { %v711_v34 = vrot.slane %v710_v33, 2 }
 0x27d   :  { %v712_v36 = vmax.f32 %v710_v33, %v711_v34 }
 0x27f   :  { %v713_v37 = vrot.slane %v712_v36, 1 }
 0x281   :  { %v714_v39 = vmax.f32 %v712_v36, %v713_v37 }
 0x283   :  { %v718_v40 = vsel %vm717_vm5, %v714_v39, %v701_v38 }
 0x284   :  { %v721_v43 = vsel %vm720_vm6, %v718_v40, 0.0 }
 0x285   :  { %1183 = vmatmul.mubr.msk.f32.vlgmr.msra.gmra.mxu1 %vm479_vm3, %v721_v43 }
 0x286   :  { %1186 = vmatpush3.msra.mxu1 %v804_v42  ;;  %1193 = vmatprep.mubr.msk.f32.mxu1 %vm1201_vm4, %v1200_v41 }
 0x287   :  { %1187 = vmatprep.subr.mxu1 %v1200_v41 }
 0x288   :  { %1188 = vmatpush3.msra.mxu1 %v803_v44 }
 0x289   :  { %1189 = vmatprep.subr.mxu1 %v1200_v41 }
 0x28a   :  { %1190 = vmatpush3.msra.mxu1 %v802_v45 }
 0x28b   :  { %1191 = vmatprep.subr.mxu1 %v1200_v41 }
 0x28c   :  { %1192 = vmatpush3.msra.mxu1 %v801_v46 }
 0x28d   :  { %917 = vmatprep.subr.mxu1 %v887_v47 }
 0x345   :  { %v796_v49 = vpop.f32.mrf.mxu1 }
 0x346   :  { %v797_v50 = vadd.f32 %v796_v49, %v726_v48 }
 0x347   :  { %v1184_v51 = vpop.f32.mrf.mxu1 }
 0x348   :  { %v800_v52 = vmax.f32 %v797_v50, 0.0 }
 0x34a   :  { %1194 = vmatmul.mubr.msk.f32.vlgmr.msra.gmra.mxu1 %vm479_vm3, %v800_v52 }
 0x34b   :  { %918 = vmatpush1.msra.mxu1 %v886_v53  ;;  %957 = vmatprep.mubr.f32.mxu1 %v1200_v41  ;;  %v881_v41 = vld [vmem:[%s1427_s1 + $0xf8] sm:$0xff] }
 0x34c   :  { %919 = vmatprep.subr.mxu1 %v885_v54 }
 0x34d   :  { %920 = vmatpush1.msra.mxu1 %v884_v55 }
 0x34e   :  { %921 = vmatprep.subr.mxu1 %v883_v56 }
 0x34f   :  { %922 = vmatpush1.msra.mxu1 %v882_v57 }
 0x350   :  { %923 = vmatprep.subr.mxu1 %v881_v41 }
 0x351   :  { %924 = vmatpush1.msra.mxu1 %v880_v58 }
 0x40a   :  { %v875_v60 = vpop.f32.mrf.mxu1 }
 0x40b   :  { %v876_v61 = vadd.f32 %v875_v60, %v805_v59 }
 0x40c   :  { %v1195_v62 = vpop.f32.mrf.mxu1 }
 0x40d   :  { %v879_v63 = vmax.f32 %v876_v61, 0.0 }
 0x40f   :  { %1022 = vmatmul.mubr.msk.f32.vlgmr.msra.gmra.mxu1 %vm479_vm3, %v879_v63 }
 0x4cf   :  { %v959_v1 = vpop.f32.mrf.mxu1 }
 0x4d0   :  { %v960_v3 = vadd.f32 %v959_v1, %v888_v0 }
 0x4d1   :  { %v961_v4 = vpop.f32.mrf.mxu1 }
 0x4d2   :  { %964 = vst [vmem:[%s1430_s3] sm:$0xff] %v960_v3  ;;  %v962_v5 = vadd.f32 %v961_v4, %v889_v2 }
 0x4d4   :  { %966 = vst.msk [vmem:[%s1430_s3 + $0x8] sm:$0xff] %vm965_vm7, %v962_v5 }

</bundles_post_ra>
